<compile_context>
chip_gen: v7x
topology: tpu7x:2x2x1
jax: 0.10.0
libtpu: 0.0.40
codegen_flags: <defaults>
</compile_context>

<pallas_src>
import functools

import jax
import jax.numpy as jnp
from jax.experimental import pallas as pl
from jax.experimental.pallas import tpu as pltpu

_LANE = 128
_MAX_TILE_S = 32 * 1024                  # cap on lanes per block
_VMEM_BUDGET_BYTES = 8 * 1024 * 1024     # conservative: fits v5e's 16 MiB scoped default


def _round_up(a, b):
    return (a + b - 1) // b * b


def _pick_tile(S, N, C, x_itemsize):
    """Pick the largest lane tile (multiple of 128) whose working set fits VMEM.

    Budget accounts for: double-buffered logits + target input blocks, the two
    resident (C, tile) f32 accumulators, and ~6 f32 element-wise temporaries of
    shape (N, C, tile) created in the kernel body.
    Returns (tile_s, S_padded).
    """
    per_lane = (2 * (N * C * x_itemsize + N * 4)   # pipelined x + target buffers
                + 2 * C * 4                        # num/den accumulators
                + 6 * N * C * 4)                   # in-kernel f32 temporaries
    cap = (_VMEM_BUDGET_BYTES // per_lane) // _LANE * _LANE
    cap = max(_LANE, min(_MAX_TILE_S, cap))
    s128 = _round_up(S, _LANE)
    if s128 <= cap:                        # whole spatial extent in one tile
        return s128, s128
    if S % _LANE == 0:                     # prefer a divisor of S (no host-side pad copy)
        d = cap
        while d >= max(_LANE, cap // 2):
            if S % d == 0:
                return d, S
            d -= _LANE
    return cap, _round_up(S, cap)          # pad S up to a multiple of the tile


def _dice_sums_kernel(x_ref, t_ref, num_ref, den_ref, num_acc, den_acc,
                      *, activation, masked):
    i = pl.program_id(1)                   # inner (reduction) axis over spatial tiles

    @pl.when(i == 0)
    def _():
        num_acc[...] = jnp.zeros_like(num_acc)
        den_acc[...] = jnp.zeros_like(den_acc)

    x = x_ref[...].astype(jnp.float32)     # (N, C, tile_s), upcast in-register
    t = t_ref[...]                         # (N, 1, tile_s) int32 class indices

    if activation == "softmax":
        m = jnp.max(x, axis=1, keepdims=True)
        e = jnp.exp(x - m)
        probs = e * (1.0 / jnp.sum(e, axis=1, keepdims=True))   # recip + mul, not divide
    elif activation == "sigmoid":
        probs = jax.nn.sigmoid(x)
    else:
        probs = x                          # already probabilities

    # One-hot target built in-register from dense class indices.
    cids = jax.lax.broadcasted_iota(jnp.int32, x.shape, 1)      # (N, C, tile_s)
    onehot = (cids == t).astype(jnp.float32)
    if masked:                             # padded lanes carry t == -1
        probs = probs * (t >= 0).astype(jnp.float32)

    # Wide accumulation: no per-step cross-lane reduce, no (C,1) masked stores.
    num_acc[...] += jnp.sum(probs * onehot, axis=0)             # (C, tile_s)
    den_acc[...] += jnp.sum(probs + onehot, axis=0)             # (C, tile_s)

    @pl.when(i == pl.num_programs(1) - 1)
    def _():
        num_ref[...] = jnp.sum(num_acc[...], axis=1, keepdims=True)[None]   # (1, C, 1)
        den_ref[...] = jnp.sum(den_acc[...], axis=1, keepdims=True)[None]   # (1, C, 1)


def _dice_channel_sums_pallas(logits, target, *, activation="softmax"):
    """Per-channel sum(probs*onehot) and sum(probs+onehot) over batch+spatial."""
    N, C = int(logits.shape[0]), int(logits.shape[1])
    S = 1
    for d in logits.shape[2:]:
        S *= int(d)

    x = logits.reshape(N, C, S)                      # keep native dtype (bf16 OK)
    t = target.reshape(N, 1, S).astype(jnp.int32)

    tile_s, s_pad = _pick_tile(S, N, C, x.dtype.itemsize)
    masked = s_pad != S
    if masked:
        x = jnp.pad(x, ((0, 0), (0, 0), (0, s_pad - S)))
        t = jnp.pad(t, ((0, 0), (0, 0), (0, s_pad - S)), constant_values=-1)

    n_tiles = s_pad // tile_s
    n_shards = 2 if (n_tiles >= 2 and n_tiles % 2 == 0) else 1   # v7x megacore split
    tiles_per_shard = n_tiles // n_shards

    kernel = functools.partial(_dice_sums_kernel, activation=activation,
                               masked=masked)

    num, den = pl.pallas_call(
        kernel,
        out_shape=(jax.ShapeDtypeStruct((n_shards, C, 1), jnp.float32),
                   jax.ShapeDtypeStruct((n_shards, C, 1), jnp.float32)),
        grid_spec=pltpu.PrefetchScalarGridSpec(
            num_scalar_prefetch=0,
            grid=(n_shards, tiles_per_shard),
            in_specs=[
                pl.BlockSpec((N, C, tile_s),
                             lambda o, i: (0, 0, o * tiles_per_shard + i)),
                pl.BlockSpec((N, 1, tile_s),
                             lambda o, i: (0, 0, o * tiles_per_shard + i)),
            ],
            out_specs=[
                pl.BlockSpec((1, C, 1), lambda o, i: (o, 0, 0)),
                pl.BlockSpec((1, C, 1), lambda o, i: (o, 0, 0)),
            ],
            scratch_shapes=[pltpu.VMEM((C, tile_s), jnp.float32),
                            pltpu.VMEM((C, tile_s), jnp.float32)],
        ),
        compiler_params=pltpu.CompilerParams(
            dimension_semantics=("parallel", "arbitrary"),
            vmem_limit_bytes=32 * 1024 * 1024),
    )(x, t)

    num_c = jnp.sum(num[:, :, 0], axis=0)            # (C,) combine per-shard partials
    den_c = jnp.sum(den[:, :, 0], axis=0)            # (C,)
    return num_c, den_c


def dice_loss_per_channel_pallas(logits, target, weight, *, eps=1e-4,
                                 activation="softmax"):
    """Returns the weighted per-channel dice loss, shape (C,)."""
    num_c, den_c = _dice_channel_sums_pallas(logits, target,
                                             activation=activation)
    loss_c = 1.0 - 2.0 * num_c / (den_c + eps)
    w = jnp.asarray(weight, jnp.float32)
    return w * loss_c


class DiceLoss:
    """JAX/Pallas equivalent of the PyTorch DiceLoss module.

    Expects output of shape (N, C, *spatial) and target of dense class
    indices with shape (N, *spatial).
    """
    # TODO(synk): the same-shape (already one-hot, float) target path is not
    # lowered to the kernel; only dense class-index targets are supported.

    def __init__(self, apply_activation_function="softmax", weight=1.0,
                 ignore_index=False, no_reduction=False, eps=1e-4):
        self.activation = apply_activation_function
        self.weight = jnp.asarray(weight, jnp.float32)   # deterministic buffer
        self.ignore_index = ignore_index
        self.no_reduction = no_reduction
        self.eps = eps

    def __call__(self, output, target):
        if tuple(target.shape) == tuple(output.shape):
            raise NotImplementedError(
                "one-hot (same-shape) targets are not supported by the Pallas path")
        wl = dice_loss_per_channel_pallas(
            output, target, self.weight, eps=self.eps,
            activation=self.activation)
        if self.ignore_index:
            wl = wl[1:]
        if self.no_reduction:
            return wl
        return jnp.mean(wl)


def _dice_loss_ref(logits, target, weight=1.0, eps=1e-4):
    """Pure-JAX reference matching the PyTorch semantics (softmax path)."""
    probs = jax.nn.softmax(logits.astype(jnp.float32), axis=1)
    C = probs.shape[1]
    onehot = jax.nn.one_hot(target, C, axis=1, dtype=jnp.float32)
    reduce_axes = (0,) + tuple(range(2, probs.ndim))
    numerator = 2.0 * jnp.sum(probs * onehot, axis=reduce_axes)
    denominator = jnp.sum(probs + onehot, axis=reduce_axes) + eps
    loss_per_channel = 1.0 - numerator / denominator
    return jnp.mean(weight * loss_per_channel)


if __name__ == "__main__":
    key = jax.random.PRNGKey(0)
    k1, k2, k3, k4 = jax.random.split(key, 4)

    loss_fn = DiceLoss(apply_activation_function="softmax",
                       weight=jnp.float32(1.0))

    # Case 1: small NCHW, f32 logits (spatial is a multiple of 128).
    N, C, H, W = 2, 4, 16, 16
    logits = jax.random.normal(k1, (N, C, H, W), dtype=jnp.float32)
    target = jax.random.randint(k2, (N, H, W), minval=0, maxval=C,
                                dtype=jnp.int32)
    loss = jax.block_until_ready(loss_fn(logits, target))
    ref = _dice_loss_ref(logits, target, weight=1.0, eps=1e-4)
    assert jnp.allclose(loss, ref, atol=1e-5, rtol=1e-5), (loss, ref)

    # Case 2: spatial extent not a multiple of 128 -> exercises the padded /
    # masked lane path (no full-S fallback anymore).
    H2, W2 = 15, 15
    logits2 = jax.random.normal(k3, (N, C, H2, W2), dtype=jnp.float32)
    target2 = jax.random.randint(k4, (N, H2, W2), minval=0, maxval=C,
                                 dtype=jnp.int32)
    loss2 = jax.block_until_ready(loss_fn(logits2, target2))
    ref2 = _dice_loss_ref(logits2, target2, weight=1.0, eps=1e-4)
    assert jnp.allclose(loss2, ref2, atol=1e-5, rtol=1e-5), (loss2, ref2)

    print("KERNEL_OK")
</pallas_src>

<mosaic_0001>
module attributes {stable_mosaic.version = 11 : i64} {
  func.func @_dice_sums_kernel(%arg0: i32, %arg1: i32, %arg2: memref<2x4x256xf32, #tpu.memory_space<vmem>>, %arg3: memref<2x1x256xi32, #tpu.memory_space<vmem>>, %arg4: memref<1x4x1xf32, #tpu.memory_space<vmem>>, %arg5: memref<1x4x1xf32, #tpu.memory_space<vmem>>, %arg6: memref<4x256xf32, #tpu.memory_space<vmem>>, %arg7: memref<4x256xf32, #tpu.memory_space<vmem>>) attributes {dimension_semantics = [#tpu.dimension_semantics<parallel>, #tpu.dimension_semantics<arbitrary>], iteration_bounds = array<i64: 1, 1>, scalar_prefetch = 0 : i64, scratch_operands = 2 : i64, tpu.core_type = #tpu.core_type<tc>, window_params = [{transform_indices = @transform_0, window_bounds = array<i64: 2, 4, 256>}, {transform_indices = @transform_1, window_bounds = array<i64: 2, 1, 256>}, {transform_indices = @transform_2, window_bounds = array<i64: 1, 4, 1>}, {transform_indices = @transform_3, window_bounds = array<i64: 1, 4, 1>}]} {
    %c0_i32 = arith.constant 0 : i32
    %0 = arith.cmpi eq, %arg1, %c0_i32 : i32
    %1 = arith.extui %0 : i1 to i32
    %c0_i32_0 = arith.constant 0 : i32
    %2 = arith.cmpi ne, %1, %c0_i32_0 : i32
    scf.if %2 {
      %cst_20 = arith.constant 0.000000e+00 : f32
      %34 = vector.broadcast %cst_20 : f32 to vector<4x256xf32>
      %c0_21 = arith.constant 0 : index
      %c0_22 = arith.constant 0 : index
      %35 = vector.load %arg6[%c0_21, %c0_22] : memref<4x256xf32, #tpu.memory_space<vmem>>, vector<4x256xf32>
      tpu.vector_store %arg6[%c0_21, %c0_22], %34 {strides = array<i32>} : memref<4x256xf32, #tpu.memory_space<vmem>>, vector<4x256xf32>,
      %cst_23 = arith.constant 0.000000e+00 : f32
      %36 = vector.broadcast %cst_23 : f32 to vector<4x256xf32>
      %c0_24 = arith.constant 0 : index
      %c0_25 = arith.constant 0 : index
      %37 = vector.load %arg7[%c0_24, %c0_25] : memref<4x256xf32, #tpu.memory_space<vmem>>, vector<4x256xf32>
      tpu.vector_store %arg7[%c0_24, %c0_25], %36 {strides = array<i32>} : memref<4x256xf32, #tpu.memory_space<vmem>>, vector<4x256xf32>,
    } else {
    }
    %c0 = arith.constant 0 : index
    %c0_1 = arith.constant 0 : index
    %c0_2 = arith.constant 0 : index
    %3 = vector.load %arg2[%c0, %c0_1, %c0_2] : memref<2x4x256xf32, #tpu.memory_space<vmem>>, vector<2x4x256xf32>
    %c0_3 = arith.constant 0 : index
    %c0_4 = arith.constant 0 : index
    %c0_5 = arith.constant 0 : index
    %4 = vector.load %arg3[%c0_3, %c0_4, %c0_5] : memref<2x1x256xi32, #tpu.memory_space<vmem>>, vector<2x1x256xi32>
    %cst = arith.constant dense<0xFF800000> : vector<2x256xf32>
    %5 = vector.multi_reduction <maximumf>, %3, %cst [1] : vector<2x4x256xf32> to vector<2x256xf32>
    %6 = vector.shape_cast %5 : vector<2x256xf32> to vector<2x1x256xf32>
    %7 = vector.broadcast %6 : vector<2x1x256xf32> to vector<2x4x256xf32>
    %8 = arith.subf %3, %7 : vector<2x4x256xf32>
    %9 = math.exp %8 : vector<2x4x256xf32>
    %cst_6 = arith.constant dense<0.000000e+00> : vector<2x256xf32>
    %10 = vector.multi_reduction <add>, %9, %cst_6 [1] : vector<2x4x256xf32> to vector<2x256xf32>
    %11 = vector.shape_cast %10 : vector<2x256xf32> to vector<2x1x256xf32>
    %cst_7 = arith.constant 1.000000e+00 : f32
    %12 = vector.broadcast %cst_7 : f32 to vector<2x1x256xf32>
    %13 = arith.divf %12, %11 : vector<2x1x256xf32>
    %14 = vector.broadcast %13 : vector<2x1x256xf32> to vector<2x4x256xf32>
    %15 = arith.mulf %9, %14 : vector<2x4x256xf32>
    %16 = tpu.iota {dimensions = array<i32: 1>} : vector<2x4x256xi32>
    %17 = vector.broadcast %4 : vector<2x1x256xi32> to vector<2x4x256xi32>
    %18 = arith.cmpi eq, %16, %17 : vector<2x4x256xi32>
    %19 = arith.extui %18 : vector<2x4x256xi1> to vector<2x4x256xi32>
    %20 = arith.sitofp %19 : vector<2x4x256xi32> to vector<2x4x256xf32>
    %c0_8 = arith.constant 0 : index
    %c0_9 = arith.constant 0 : index
    %21 = vector.load %arg6[%c0_8, %c0_9] : memref<4x256xf32, #tpu.memory_space<vmem>>, vector<4x256xf32>
    %22 = arith.mulf %15, %20 : vector<2x4x256xf32>
    %cst_10 = arith.constant dense<0.000000e+00> : vector<4x256xf32>
    %23 = vector.multi_reduction <add>, %22, %cst_10 [0] : vector<2x4x256xf32> to vector<4x256xf32>
    %24 = arith.addf %21, %23 : vector<4x256xf32>
    %c0_11 = arith.constant 0 : index
    %c0_12 = arith.constant 0 : index
    %25 = vector.load %arg6[%c0_11, %c0_12] : memref<4x256xf32, #tpu.memory_space<vmem>>, vector<4x256xf32>
    tpu.vector_store %arg6[%c0_11, %c0_12], %24 {strides = array<i32>} : memref<4x256xf32, #tpu.memory_space<vmem>>, vector<4x256xf32>,
    %c0_13 = arith.constant 0 : index
    %c0_14 = arith.constant 0 : index
    %26 = vector.load %arg7[%c0_13, %c0_14] : memref<4x256xf32, #tpu.memory_space<vmem>>, vector<4x256xf32>
    %27 = arith.addf %15, %20 : vector<2x4x256xf32>
    %cst_15 = arith.constant dense<0.000000e+00> : vector<4x256xf32>
    %28 = vector.multi_reduction <add>, %27, %cst_15 [0] : vector<2x4x256xf32> to vector<4x256xf32>
    %29 = arith.addf %26, %28 : vector<4x256xf32>
    %c0_16 = arith.constant 0 : index
    %c0_17 = arith.constant 0 : index
    %30 = vector.load %arg7[%c0_16, %c0_17] : memref<4x256xf32, #tpu.memory_space<vmem>>, vector<4x256xf32>
    tpu.vector_store %arg7[%c0_16, %c0_17], %29 {strides = array<i32>} : memref<4x256xf32, #tpu.memory_space<vmem>>, vector<4x256xf32>,
    %c0_i32_18 = arith.constant 0 : i32
    %31 = arith.cmpi eq, %arg1, %c0_i32_18 : i32
    %32 = arith.extui %31 : i1 to i32
    %c0_i32_19 = arith.constant 0 : i32
    %33 = arith.cmpi ne, %32, %c0_i32_19 : i32
    scf.if %33 {
      %c0_20 = arith.constant 0 : index
      %c0_21 = arith.constant 0 : index
      %34 = vector.load %arg6[%c0_20, %c0_21] : memref<4x256xf32, #tpu.memory_space<vmem>>, vector<4x256xf32>
      %cst_22 = arith.constant dense<0.000000e+00> : vector<4xf32>
      %35 = vector.multi_reduction <add>, %34, %cst_22 [1] : vector<4x256xf32> to vector<4xf32>
      %36 = vector.shape_cast %35 : vector<4xf32> to vector<4x1xf32>
      %37 = vector.shape_cast %36 : vector<4x1xf32> to vector<1x4x1xf32>
      %c0_23 = arith.constant 0 : index
      %c0_24 = arith.constant 0 : index
      %c0_25 = arith.constant 0 : index
      %38 = vector.load %arg4[%c0_23, %c0_24, %c0_25] : memref<1x4x1xf32, #tpu.memory_space<vmem>>, vector<1x4x1xf32>
      tpu.vector_store %arg4[%c0_23, %c0_24, %c0_25], %37 {strides = array<i32>} : memref<1x4x1xf32, #tpu.memory_space<vmem>>, vector<1x4x1xf32>,
      %c0_26 = arith.constant 0 : index
      %c0_27 = arith.constant 0 : index
      %39 = vector.load %arg7[%c0_26, %c0_27] : memref<4x256xf32, #tpu.memory_space<vmem>>, vector<4x256xf32>
      %cst_28 = arith.constant dense<0.000000e+00> : vector<4xf32>
      %40 = vector.multi_reduction <add>, %39, %cst_28 [1] : vector<4x256xf32> to vector<4xf32>
      %41 = vector.shape_cast %40 : vector<4xf32> to vector<4x1xf32>
      %42 = vector.shape_cast %41 : vector<4x1xf32> to vector<1x4x1xf32>
      %c0_29 = arith.constant 0 : index
      %c0_30 = arith.constant 0 : index
      %c0_31 = arith.constant 0 : index
      %43 = vector.load %arg5[%c0_29, %c0_30, %c0_31] : memref<1x4x1xf32, #tpu.memory_space<vmem>>, vector<1x4x1xf32>
      tpu.vector_store %arg5[%c0_29, %c0_30, %c0_31], %42 {strides = array<i32>} : memref<1x4x1xf32, #tpu.memory_space<vmem>>, vector<1x4x1xf32>,
    } else {
    }
    return
  }
  func.func @transform_0(%arg0: i32, %arg1: i32) -> (i32, i32, i32) {
    %c1_i32 = arith.constant 1 : i32
    %0 = arith.muli %arg0, %c1_i32 : i32
    %1 = arith.addi %0, %arg1 : i32
    %c0_i32 = arith.constant 0 : i32
    %c0_i32_0 = arith.constant 0 : i32
    %c0_i32_1 = arith.constant 0 : i32
    return %c0_i32, %c0_i32_0, %1 : i32, i32, i32
  }
  func.func @transform_1(%arg0: i32, %arg1: i32) -> (i32, i32, i32) {
    %c1_i32 = arith.constant 1 : i32
    %0 = arith.muli %arg0, %c1_i32 : i32
    %1 = arith.addi %0, %arg1 : i32
    %c0_i32 = arith.constant 0 : i32
    %c0_i32_0 = arith.constant 0 : i32
    %c0_i32_1 = arith.constant 0 : i32
    return %c0_i32, %c0_i32_0, %1 : i32, i32, i32
  }
  func.func @transform_2(%arg0: i32, %arg1: i32) -> (i32, i32, i32) {
    %c0_i32 = arith.constant 0 : i32
    %c0_i32_0 = arith.constant 0 : i32
    %c0_i32_1 = arith.constant 0 : i32
    return %arg0, %c0_i32, %c0_i32_0 : i32, i32, i32
  }
  func.func @transform_3(%arg0: i32, %arg1: i32) -> (i32, i32, i32) {
    %c0_i32 = arith.constant 0 : i32
    %c0_i32_0 = arith.constant 0 : i32
    %c0_i32_1 = arith.constant 0 : i32
    return %arg0, %c0_i32, %c0_i32_0 : i32, i32, i32
  }
}

</mosaic_0001>

<bundles_post_ra>
// kernel: tpu_custom_call.1
= control target key start
LH: loop header
LB: loop body
LE: loop exit
PB: predicated region body
PF: predicated region fallthrough
CT: control target
= control target key end

     0   :  { %9 = vsyncpa [#allocation5], 0  ;;  %s442_s0 = inlined_call_operand.hbm [shape: f32[2,4,256], index: 0, kind: input, shape index: {}]   ;;  %s443_s1 = inlined_call_operand.hbm [shape: s32[2,1,256], index: 1, kind: input, shape index: {}]   ;;  %s444_s2 = inlined_call_operand.vmem [shape: f32[1,4,1], index: 2, kind: output, shape index: {0}]   ;;  %s445_s3 = inlined_call_operand.vmem [shape: f32[1,4,1], index: 3, kind: output, shape index: {1}]  }
   0x1   :  { %10 = vsyncpa [#allocation7], 0  ;;  %s353_s12 = smov [#allocation4]   ;;  %s305_s16 = scalar_lea.hbm %s442_s0, 256 }
   0x2   :  { %s20_s13 = sshll.u32 %s353_s12, 4  ;;  %p306_p0 = scmp.ne.s32.totalorder %s442_s0, %s305_s16  ;;  %s21_s13 = int_to_ptr.vmem [resolvable:$true] %s20_s13 }
   0x3   :  { %p309_p1 = scmp.lt.u32.totalorder %s305_s16, %s442_s0 }
   0x5   :  { %p311_p2 = pnand %p309_p1, %p306_p0 }
   0x7   :  { %314 = shalt.err (!%p311_p2)
}
   0x8   :  { %s315_s21 = scalar_lea.vmem %s21_s13, 256  ;;  %p320_p4 = scmp.lt.s32.totalorder %s21_s13, %s21_s13 }
   0x9   :  { %p316_p3 = scmp.ne.s32.totalorder %s21_s13, %s315_s21  ;;  %p321_p5 = scmp.lt.s32.totalorder %s315_s21, %s315_s21 }
   0xb   :  { %p322_p6 = por %p321_p5, %p320_p4 }
   0xd   :  { %p323_p7 = pnand %p322_p6, %p316_p3 }
   0xf   :  { %326 = shalt.err (!%p323_p7)
}
  0x10   :  { %s354_s22 = smov 128   ;;  %s355_s23 = smov 8  }
  0x11   :  { %26 = dma.hbm_to_vmem [thread:$0]  %s442_s0, 256, %s21_s13, [#allocation5], %s354_s22, %s354_s22, %s355_s23  }
  0x12   :  { %s356_s26 = smov [#allocation6]   ;;  %s327_s30 = scalar_lea.hbm %s443_s1, 64 }
  0x13   :  { %s36_s27 = sshll.u32 %s356_s26, 4  ;;  %p328_p8 = scmp.ne.s32.totalorder %s443_s1, %s327_s30  ;;  %s37_s27 = int_to_ptr.vmem [resolvable:$true] %s36_s27 }
  0x14   :  { %p331_p9 = scmp.lt.u32.totalorder %s327_s30, %s443_s1 }
  0x16   :  { %p333_p10 = pnand %p331_p9, %p328_p8 }
  0x18   :  { %336 = shalt.err (!%p333_p10)
}
  0x19   :  { %s337_s8 = scalar_lea.vmem %s37_s27, 64  ;;  %p342_p12 = scmp.lt.s32.totalorder %s37_s27, %s37_s27 }
  0x1a   :  { %p338_p11 = scmp.ne.s32.totalorder %s37_s27, %s337_s8  ;;  %p343_p13 = scmp.lt.s32.totalorder %s337_s8, %s337_s8 }
  0x1c   :  { %p344_p0 = por %p343_p13, %p342_p12 }
  0x1e   :  { %p345_p1 = pnand %p344_p0, %p338_p11 }
  0x20   :  { %348 = shalt.err (!%p345_p1)
}
  0x21   :  { %s357_s0 = smov 32   ;;  %s358_s9 = smov 2  }
  0x22   :  { %42 = dma.hbm_to_vmem [thread:$0]  %s443_s1, 64, %s37_s27, [#allocation7], %s357_s0, %s357_s0, %s358_s9  }
  0x23   :  { %349 = dma.done.wait [#allocation5], 256  }
  0x24   :  { %350 = vsyncadd [#allocation5], 4294967040 }
  0x25   :  { %351 = dma.done.wait [#allocation7], 64  }
  0x26   :  { %352 = vsyncadd [#allocation7], 4294967232  ;;  %vm69_vm0 = vcmask 1043456   ;;  %v59_v0 = vld [vmem:[#allocation4] sm:$0xff]  ;;  %v60_v1 = vld [vmem:[#allocation4 + $0x8] sm:$0xff]  ;;  %v164_v52 = vlaneseq  ;;  %vm256_vm5 = vcmask 3072  }
  0x27   :  { %v65_v2 = vcombine.high %v59_v0, %v59_v0  ;;  %v66_v3 = vcombine.high %v60_v1, %v60_v1  ;;  %v70_v4 = vsel %vm69_vm0, %v59_v0, -inf  ;;  %v84_v5 = vsel %vm69_vm0, %v60_v1, -inf }
  0x28   :  { %v71_v6 = vrot.slane %v70_v4, 4  ;;  %v85_v7 = vrot.slane %v84_v5, 4  ;;  %v165_v61 = vshrl.u32 %v164_v52, 7 }
  0x29   :  { %v77_v8 = vsel %vm69_vm0, %v65_v2, -inf  ;;  %v91_v9 = vsel %vm69_vm0, %v66_v3, -inf }
  0x2a   :  { %v72_v10 = vmax.f32 %v70_v4, %v71_v6  ;;  %v78_v11 = vrot.slane %v77_v8, 4  ;;  %v86_v12 = vmax.f32 %v84_v5, %v85_v7  ;;  %v92_v13 = vrot.slane %v91_v9, 4 }
  0x2b   :  { %v168_v6 = vsub.s32 0, %v165_v61  ;;  %v172_v7 = vsub.s32 1, %v165_v61 }
  0x2c   :  { %v73_v14 = vrot.slane %v72_v10, 2  ;;  %v79_v15 = vmax.f32 %v77_v8, %v78_v11  ;;  %v87_v16 = vrot.slane %v86_v12, 2  ;;  %v93_v17 = vmax.f32 %v91_v9, %v92_v13  ;;  %v61_v8 = vld [vmem:[#allocation6] sm:$0x3] }
  0x2d   :  { %v173_v13 = vrot.slane %v61_v8, %v172_v7 }
  0x2e   :  { %v74_v18 = vmax.f32 %v72_v10, %v73_v14  ;;  %v80_v19 = vrot.slane %v79_v15, 2  ;;  %v88_v20 = vmax.f32 %v86_v12, %v87_v16  ;;  %v94_v21 = vrot.slane %v93_v17, 2  ;;  %v62_v10 = vld [vmem:[#allocation6 + $0x2] sm:$0x3] }
  0x2f   :  { %v169_v12 = vrot.slane %v61_v8, %v168_v6  ;;  %v177_v14 = vrot.slane %v62_v10, %v168_v6  ;;  %vm183_vm2 = vcmp.eq.s32.totalorder %v165_v61, %v173_v13 }
  0x30   :  { %v75_v22 = vrot.slane %v74_v18, 1  ;;  %v81_v23 = vmax.f32 %v79_v15, %v80_v19  ;;  %v89_v24 = vrot.slane %v88_v20, 1  ;;  %v95_v25 = vmax.f32 %v93_v17, %v94_v21 }
  0x31   :  { %v181_v15 = vrot.slane %v62_v10, %v172_v7  ;;  %vm182_vm1 = vcmp.eq.s32.totalorder %v165_v61, %v169_v12  ;;  %vm184_vm3 = vcmp.eq.s32.totalorder %v165_v61, %v177_v14  ;;  %v359_v17 = vmov 0.0  }
  0x32   :  { %v76_v26 = vmax.f32 %v74_v18, %v75_v22  ;;  %v82_v27 = vrot.slane %v81_v23, 1  ;;  %v90_v28 = vmax.f32 %v88_v20, %v89_v24  ;;  %v96_v29 = vrot.slane %v95_v25, 1 }
  0x33   :  { %vm185_vm4 = vcmp.eq.s32.totalorder %v165_v61, %v181_v15  ;;  %v278_v18 = vsel %vm182_vm1, 1.0, %v359_v17  ;;  %v279_v19 = vsel %vm183_vm2, 1.0, %v359_v17  ;;  %v280_v21 = vsel %vm184_vm3, 1.0, %v359_v17 }
  0x34   :  { %v83_v30 = vmax.f32 %v81_v23, %v82_v27  ;;  %v97_v31 = vmax.f32 %v95_v25, %v96_v29  ;;  %v281_v22 = vsel %vm185_vm4, 1.0, %v359_v17 }
  0x36   :  { %v102_v32 = vcombine.low %v76_v26, %v83_v30  ;;  %v103_v33 = vcombine.low %v90_v28, %v97_v31  ;;  %v199_v26 = vcombine.low %v278_v18, %v279_v19  ;;  %v200_v28 = vcombine.low %v280_v21, %v281_v22 }
  0x38   :  { %v106_v34 = vsub.f32 %v59_v0, %v102_v32  ;;  %v107_v35 = vsub.f32 %v60_v1, %v103_v33 }
  0x3a   :  { %v108_v36 = vmul.f32 1.442695, %v106_v34  ;;  %v110_v37 = vmul.f32 1.442695, %v107_v35 }
  0x3c   :  { %293 = vpow2.f32 %v108_v36 }
  0x3d   :  { %295 = vpow2.f32 %v110_v37 }
  0x46   :  { %v408_v38 = vpop.eup %293 }
  0x47   :  { %v410_v39 = vpop.eup %295  ;;  %v114_v40 = vcombine.high %v408_v38, %v408_v38  ;;  %v118_v41 = vsel %vm69_vm0, %v408_v38, 0.0 }
  0x48   :  { %v115_v42 = vcombine.high %v410_v39, %v410_v39  ;;  %v119_v43 = vrot.slane %v118_v41, 4  ;;  %v132_v44 = vsel %vm69_vm0, %v410_v39, 0.0 }
  0x49   :  { %v125_v45 = vsel %vm69_vm0, %v114_v40, 0.0  ;;  %v133_v46 = vrot.slane %v132_v44, 4 }
  0x4a   :  { %v120_v47 = vadd.f32 %v119_v43, %v118_v41  ;;  %v126_v48 = vrot.slane %v125_v45, 4  ;;  %v139_v49 = vsel %vm69_vm0, %v115_v42, 0.0 }
  0x4b   :  { %v134_v50 = vadd.f32 %v133_v46, %v132_v44  ;;  %v140_v51 = vrot.slane %v139_v49, 4 }
  0x4c   :  { %v121_v53 = vrot.slane %v120_v47, 2  ;;  %v127_v54 = vadd.f32 %v126_v48, %v125_v45 }
  0x4d   :  { %v135_v55 = vrot.slane %v134_v50, 2  ;;  %v141_v56 = vadd.f32 %v140_v51, %v139_v49 }
  0x4e   :  { %v122_v57 = vadd.f32 %v121_v53, %v120_v47  ;;  %v128_v58 = vrot.slane %v127_v54, 2 }
  0x4f   :  { %v136_v59 = vadd.f32 %v135_v55, %v134_v50  ;;  %v142_v60 = vrot.slane %v141_v56, 2 }
  0x50   :  { %v123_v62 = vrot.slane %v122_v57, 1  ;;  %v129_v63 = vadd.f32 %v128_v58, %v127_v54 }
  0x51   :  { %v137_v0 = vrot.slane %v136_v59, 1  ;;  %v143_v1 = vadd.f32 %v142_v60, %v141_v56 }
  0x52   :  { %v124_v2 = vadd.f32 %v123_v62, %v122_v57  ;;  %v130_v3 = vrot.slane %v129_v63, 1 }
  0x53   :  { %v138_v4 = vadd.f32 %v137_v0, %v136_v59  ;;  %v144_v5 = vrot.slane %v143_v1, 1 }
  0x54   :  { %v131_v9 = vadd.f32 %v130_v3, %v129_v63  ;;  %297 = vrcp.f32 %v124_v2 }
  0x55   :  { %v145_v11 = vadd.f32 %v144_v5, %v143_v1  ;;  %299 = vrcp.f32 %v138_v4 }
  0x56   :  { %301 = vrcp.f32 %v131_v9 }
  0x57   :  { %303 = vrcp.f32 %v145_v11 }
  0x5e   :  { %v298_v16 = vpop.eup %297 }
  0x5f   :  { %v300_v20 = vpop.eup %299 }
  0x60   :  { %v302_v23 = vpop.eup %301 }
  0x61   :  { %v304_v24 = vpop.eup %303  ;;  %v158_v25 = vcombine.low %v298_v16, %v302_v23 }
  0x62   :  { %v159_v27 = vcombine.low %v300_v20, %v304_v24 }
  0x63   :  { %v162_v29 = vmul.f32 %v408_v38, %v158_v25 }
  0x64   :  { %v163_v30 = vmul.f32 %v410_v39, %v159_v27 }
  0x65   :  { %v203_v31 = vmul.f32 %v199_v26, %v162_v29  ;;  %v224_v32 = vadd.f32 %v199_v26, %v162_v29 }
  0x66   :  { %v204_v33 = vmul.f32 %v200_v28, %v163_v30  ;;  %v225_v34 = vadd.f32 %v200_v28, %v163_v30 }
  0x67   :  { %v207_v35 = vcombine.high %v203_v31, %v203_v31  ;;  %v211_v36 = vsel %vm69_vm0, %v203_v31, 0.0  ;;  %v228_v37 = vcombine.high %v224_v32, %v224_v32  ;;  %v232_v40 = vsel %vm69_vm0, %v224_v32, 0.0 }
  0x68   :  { %v208_v41 = vcombine.high %v204_v33, %v204_v33  ;;  %v212_v42 = vsel %vm69_vm0, %v204_v33, 0.0  ;;  %v229_v43 = vcombine.high %v225_v34, %v225_v34  ;;  %v233_v44 = vsel %vm69_vm0, %v225_v34, 0.0 }
  0x69   :  { %v213_v45 = vadd.f32 %v212_v42, %v211_v36  ;;  %v214_v38 = vsel %vm69_vm0, %v207_v35, 0.0  ;;  %v234_v39 = vadd.f32 %v233_v44, %v232_v40  ;;  %v235_v46 = vsel %vm69_vm0, %v228_v37, 0.0 }
  0x6a   :  { %v215_v47 = vsel %vm69_vm0, %v208_v41, 0.0  ;;  %v236_v48 = vsel %vm69_vm0, %v229_v43, 0.0 }
  0x6b   :  { %v216_v49 = vadd.f32 %v215_v47, %v214_v38  ;;  %v237_v50 = vadd.f32 %v236_v48, %v235_v46 }
  0x6d   :  { %v219_v51 = vcombine.low %v213_v45, %v216_v49  ;;  %v282_v52 = vcombine.low %v216_v49, %v216_v49  ;;  %v240_v53 = vcombine.low %v234_v39, %v237_v50  ;;  %v283_v54 = vcombine.low %v237_v50, %v237_v50 }
  0x6f   :  { %v251_v55 = vsel %vm69_vm0, %v219_v51, 0.0  ;;  %v252_v56 = vsel %vm69_vm0, %v282_v52, 0.0  ;;  %v262_v57 = vsel %vm69_vm0, %v240_v53, 0.0  ;;  %v263_v58 = vsel %vm69_vm0, %v283_v54, 0.0 }
  0x70   :  { %v253_v59 = vadd.f32 %v252_v56, %v251_v55  ;;  %v264_v60 = vadd.f32 %v263_v58, %v262_v57 }
  0x72   :  { %254 = vadd.xlane.f32.xlu0 %v253_v59 }
  0x76   :  { %265 = vadd.xlane.f32.xlu0 %v264_v60 }
  0xff   :  { %v255_v61 = vpop.xlane.xlu0 %254 }
 0x100   :  { %257 = vst.msk [vmem:[%s444_s2] sm:$0xf] %vm256_vm5, %v255_v61 }
 0x103   :  { %v266_v62 = vpop.xlane.xlu0 %265 }
 0x104   :  { %267 = vst.msk [vmem:[%s445_s3] sm:$0xf] %vm256_vm5, %v266_v62 }
 0x105   :  { %276 = vsyncpa [#allocation5], 1 }
 0x106   :  { %277 = vsyncpa [#allocation7], 1 }

</bundles_post_ra>
